<compile_context>
chip_gen: v6e
topology: v6e:2x2x1
jax: 0.10.0
libtpu: 0.0.40
codegen_flags: <defaults>
</compile_context>

<pallas_src>
import jax
import jax.numpy as jnp
from jax.experimental import pallas as pl
from jax.experimental.pallas import tpu as pltpu

HIDDEN = 32        # hidden_size
OUTPUT = 48        # output_size
MAX_LENGTH = 20    # max_length

H, L, O = HIDDEN, MAX_LENGTH, OUTPUT

# Packed weight-slab column layout. Every matmul's RHS block starts on a 128-lane
# boundary so the static ref slices below are free views.
C_M1_0, C_M1_1 = 0, L + 4 * H          # [0:148)   fused cat(x,h) block (block-diagonal-ish)
C_G0, C_G1 = 256, 256 + 3 * H          # [256:352) GRU input-side gates [wir|wiz|win]
C_O0, C_O1 = 384, 384 + O              # [384:432) output projection wo
W_COLS = C_O1                          # 432


def _decoder_step(x, h, enc_ref, w_ref, b_ref):
  """One decoder step.

  x, h: (1, H) arrays (MXU dtype); enc_ref: (L, H) ref holding encoder_outputs @ wca;
  w_ref: (2H, W_COLS) weight slab ref; b_ref: (1, W_COLS) f32 bias slab ref.
  Returns (log_softmax (1,O), h_new (1,H), attn_weights (1,L)) all f32.
  """
  xh = jnp.concatenate([x, h], axis=1)                                   # (1, 2H)

  # Fused matmul 1 (single MXU push). RHS row/col layout:
  #   rows 0:H   (x): [ wax | wcx |  0  |  0  |  0  ]
  #   rows H:2H  (h): [ wah |  0  | whr | whz | whn ]
  # -> cols [0:L)        x@wax + h@wah + ba        (attention logits)
  #    cols [L:L+H)      x@wcx + bc                (attn_combine, x part)
  #    cols [L+H:L+2H)   h@whr + br
  #    cols [L+2H:L+3H)  h@whz + bz
  #    cols [L+3H:L+4H)  h@whn + b_hn
  m1 = (jnp.dot(xh, w_ref[:, C_M1_0:C_M1_1], preferred_element_type=jnp.float32)
        + b_ref[:, C_M1_0:C_M1_1])

  # attn_weights = softmax(attn(cat(x, h)))
  logits = m1[:, 0:L]
  mm = jnp.max(logits, axis=1, keepdims=True)
  e = jnp.exp(logits - mm)
  s = jnp.sum(e, axis=1, keepdims=True)
  inv = pl.reciprocal(s, approx=True)      # EUP slot (keeps the divide off the VALU)
  inv = inv * (2.0 - s * inv)              # one Newton step -> near-exact reciprocal
  aw = e * inv                                                           # (1, L), f32

  # attn_combine with wca folded: (aw @ enc) @ wca == aw @ (enc @ wca)
  comb = m1[:, L:L + H] + jnp.dot(aw.astype(enc_ref.dtype), enc_ref[...],
                                  preferred_element_type=jnp.float32)
  g = jnp.maximum(comb, 0.0)                                             # relu, (1, H)

  # Single-step GRU cell (PyTorch gate order r, z, n).
  gr = (jnp.dot(g.astype(w_ref.dtype), w_ref[0:H, C_G0:C_G1],
                preferred_element_type=jnp.float32)
        + b_ref[:, C_G0:C_G1])                     # [g@wir | g@wiz | g@win + b_in]
  r = jax.nn.sigmoid(gr[:, 0:H] + m1[:, L + H:L + 2 * H])
  z = jax.nn.sigmoid(gr[:, H:2 * H] + m1[:, L + 2 * H:L + 3 * H])
  n = jnp.tanh(gr[:, 2 * H:3 * H] + r * m1[:, L + 3 * H:L + 4 * H])
  h_new = (1.0 - z) * n + z * h                                          # (1, H), f32

  # output = log_softmax(out(h_new))
  o = (jnp.dot(h_new.astype(w_ref.dtype), w_ref[0:H, C_O0:C_O1],
               preferred_element_type=jnp.float32)
       + b_ref[:, C_O0:C_O1])
  mo = jnp.max(o, axis=1, keepdims=True)
  lse = jnp.log(jnp.sum(jnp.exp(o - mo), axis=1, keepdims=True))
  logp = o - mo - lse                                                    # (1, O)
  return logp, h_new, aw


# ------------------------- single-step kernel (module forward) -------------------------

def attn_decoder_kernel(x_ref, h_ref, enc_ref, w_ref, b_ref, out_ref, hid_ref, aw_ref):
  logp, h_new, aw = _decoder_step(x_ref[...], h_ref[...], enc_ref, w_ref, b_ref)
  out_ref[...] = logp
  hid_ref[...] = h_new.reshape(hid_ref.shape)
  aw_ref[...] = aw


def attn_decoder_forward(x, hidden, enc_wca, packed):
  """x: (1,H) or (H,); hidden: (1,1,H); enc_wca: (L,H) = encoder_outputs @ wca."""
  dt = packed['W'].dtype
  x2d = x.reshape(1, H).astype(dt)
  h2d = hidden.reshape(1, H).astype(dt)
  vmem = pl.BlockSpec(memory_space=pltpu.MemorySpace.VMEM)
  out, hid, aw = pl.pallas_call(
      attn_decoder_kernel,
      out_shape=(jax.ShapeDtypeStruct((1, O), jnp.float32),
                 jax.ShapeDtypeStruct((1, 1, H), jnp.float32),
                 jax.ShapeDtypeStruct((1, L), jnp.float32)),
      in_specs=[vmem, vmem, vmem, vmem, vmem],
      out_specs=(vmem, vmem, vmem),
  )(x2d, h2d, enc_wca.astype(dt), packed['W'], packed['B'])
  return out, hid, aw


# --------------------- amortized multi-step decode (grid over steps) --------------------

def attn_decoder_seq_kernel(x_ref, h0_ref, enc_ref, w_ref, b_ref,
                            out_ref, hid_ref, aw_ref, h_scratch):
  t = pl.program_id(0)

  @pl.when(t == 0)
  def _():
    h_scratch[...] = h0_ref[...]

  logp, h_new, aw = _decoder_step(x_ref[...], h_scratch[...], enc_ref, w_ref, b_ref)
  h_scratch[...] = h_new.astype(h_scratch.dtype)
  out_ref[...] = logp
  hid_ref[...] = h_new
  aw_ref[...] = aw


def attn_decoder_decode(xs, hidden0, enc_wca, packed):
  """Run T module-forward steps in ONE pallas_call (teacher-forced inputs `xs`).

  W/B/enc_wca use constant index_maps so they are DMA'd once and stay VMEM-resident;
  the hidden state is carried in a VMEM scratch across the sequential ("arbitrary") grid.
  """
  T = xs.shape[0]
  dt = packed['W'].dtype
  xs3 = xs.reshape(T, 1, H).astype(dt)
  h03 = hidden0.reshape(1, 1, H).astype(dt)
  logp, hid, aw = pl.pallas_call(
      attn_decoder_seq_kernel,
      grid=(T,),
      out_shape=(jax.ShapeDtypeStruct((T, 1, O), jnp.float32),
                 jax.ShapeDtypeStruct((T, 1, H), jnp.float32),
                 jax.ShapeDtypeStruct((T, 1, L), jnp.float32)),
      in_specs=[pl.BlockSpec((None, 1, H), lambda t: (t, 0, 0)),
                pl.BlockSpec((None, 1, H), lambda t: (0, 0, 0)),
                pl.BlockSpec((L, H), lambda t: (0, 0)),
                pl.BlockSpec((2 * H, W_COLS), lambda t: (0, 0)),
                pl.BlockSpec((1, W_COLS), lambda t: (0, 0))],
      out_specs=(pl.BlockSpec((None, 1, O), lambda t: (t, 0, 0)),
                 pl.BlockSpec((None, 1, H), lambda t: (t, 0, 0)),
                 pl.BlockSpec((None, 1, L), lambda t: (t, 0, 0))),
      scratch_shapes=[pltpu.VMEM((1, H), dt)],
      compiler_params=pltpu.CompilerParams(dimension_semantics=("arbitrary",)),
  )(xs3, h03, enc_wca.astype(dt), packed['W'], packed['B'])
  return logp.reshape(T, O), hid.reshape(T, H), aw.reshape(T, L)


# ----------------------------------- parameter packing ----------------------------------

def pack_params(p, mxu_dtype=jnp.float32):
  """One-time packing into a lane-aligned slab. Weights in `mxu_dtype`, bias stays f32."""
  W = jnp.zeros((2 * H, W_COLS), jnp.float32)
  # Fused cat(x,h) block: attn-logit columns carry BOTH wax (x rows) and wah (h rows).
  W = W.at[0:H, 0:L].set(p['wax'])
  W = W.at[H:2 * H, 0:L].set(p['wah'])
  W = W.at[0:H, L:L + H].set(p['wcx'])
  W = W.at[H:2 * H, L + H:L + 2 * H].set(p['whr'])
  W = W.at[H:2 * H, L + 2 * H:L + 3 * H].set(p['whz'])
  W = W.at[H:2 * H, L + 3 * H:L + 4 * H].set(p['whn'])
  # GRU input-side gates (rows 0:H only).
  W = W.at[0:H, C_G0:C_G0 + H].set(p['wir'])
  W = W.at[0:H, C_G0 + H:C_G0 + 2 * H].set(p['wiz'])
  W = W.at[0:H, C_G0 + 2 * H:C_G0 + 3 * H].set(p['win'])
  # Output projection.
  W = W.at[0:H, C_O0:C_O0 + O].set(p['wo'])

  B = jnp.zeros((1, W_COLS), jnp.float32)
  B = B.at[:, 0:L].set(p['ba'])
  B = B.at[:, L:L + H].set(p['bc'])
  B = B.at[:, L + H:L + 2 * H].set(p['br'])
  B = B.at[:, L + 2 * H:L + 3 * H].set(p['bz'])
  B = B.at[:, L + 3 * H:L + 4 * H].set(p['b_hn'])
  B = B.at[:, C_G0 + 2 * H:C_G0 + 3 * H].set(p['b_in'])
  B = B.at[:, C_O0:C_O0 + O].set(p['bo'])
  return {'W': W.astype(mxu_dtype), 'B': B}


def precompute_encoder(encoder_outputs, params, mxu_dtype=jnp.float32):
  """Per-sequence one-time fold: enc_wca = encoder_outputs @ wca (outside the token loop)."""
  enc_wca = jnp.dot(encoder_outputs.astype(jnp.float32), params['wca'])
  return enc_wca.astype(mxu_dtype)


# --------------------------------------- reference --------------------------------------

def reference_forward(x, hidden, enc, p):
  """Pure-JAX reference mirroring the PyTorch forward (with GRU-cell recurrence)."""
  x2 = x.reshape(1, -1).astype(jnp.float32)
  h2 = hidden.reshape(1, -1).astype(jnp.float32)
  logits = x2 @ p['wax'] + h2 @ p['wah'] + p['ba']
  aw = jax.nn.softmax(logits, axis=1)
  applied = aw @ enc
  g = jax.nn.relu(x2 @ p['wcx'] + applied @ p['wca'] + p['bc'])
  r = jax.nn.sigmoid(g @ p['wir'] + h2 @ p['whr'] + p['br'])
  z = jax.nn.sigmoid(g @ p['wiz'] + h2 @ p['whz'] + p['bz'])
  n = jnp.tanh(g @ p['win'] + p['b_in'] + r * (h2 @ p['whn'] + p['b_hn']))
  hn = (1.0 - z) * n + z * h2
  o = hn @ p['wo'] + p['bo']
  return jax.nn.log_softmax(o, axis=1), hn.reshape(1, 1, -1), aw


def init_params(key):
  keys = jax.random.split(key, 20)
  s = 0.1
  rnd = lambda k, shape: (s * jax.random.normal(k, shape)).astype(jnp.float32)
  return {
      'wax': rnd(keys[0], (H, L)), 'wah': rnd(keys[1], (H, L)),
      'ba': rnd(keys[2], (1, L)),
      'wcx': rnd(keys[3], (H, H)), 'wca': rnd(keys[4], (H, H)),
      'bc': rnd(keys[5], (1, H)),
      'wir': rnd(keys[6], (H, H)), 'wiz': rnd(keys[7], (H, H)),
      'win': rnd(keys[8], (H, H)),
      'whr': rnd(keys[9], (H, H)), 'whz': rnd(keys[10], (H, H)),
      'whn': rnd(keys[11], (H, H)),
      'br': rnd(keys[12], (1, H)),   # = b_ir + b_hr (folded)
      'bz': rnd(keys[13], (1, H)),   # = b_iz + b_hz (folded)
      'b_in': rnd(keys[14], (1, H)),
      'b_hn': rnd(keys[15], (1, H)),
      'wo': rnd(keys[16], (H, O)), 'bo': rnd(keys[17], (1, O)),
  }


if __name__ == "__main__":
  key = jax.random.PRNGKey(0)
  k_p, k_x, k_h, k_e, k_s = jax.random.split(key, 5)

  params = init_params(k_p)

  x = jax.random.normal(k_x, (1, HIDDEN), dtype=jnp.float32)           # "embedded" input
  hidden = jax.random.normal(k_h, (1, 1, HIDDEN), dtype=jnp.float32)   # recurrent hidden
  enc = jax.random.normal(k_e, (MAX_LENGTH, HIDDEN), dtype=jnp.float32)

  ref_out, ref_hid, ref_aw = reference_forward(x, hidden, enc, params)

  # --- single-step, f32 MXU weights (exact path) ---
  packed32 = pack_params(params, mxu_dtype=jnp.float32)
  enc32 = precompute_encoder(enc, params, mxu_dtype=jnp.float32)
  out, new_hidden, attn_w = attn_decoder_forward(x, hidden, enc32, packed32)
  jax.block_until_ready((out, new_hidden, attn_w))
  assert out.shape == (1, OUTPUT)
  assert new_hidden.shape == (1, 1, HIDDEN)
  assert attn_w.shape == (1, MAX_LENGTH)
  assert jnp.allclose(out, ref_out, atol=1e-4, rtol=1e-4)
  assert jnp.allclose(new_hidden, ref_hid, atol=1e-4, rtol=1e-4)
  assert jnp.allclose(attn_w, ref_aw, atol=1e-4, rtol=1e-4)

  # --- single-step, bf16 MXU weights (v6e/v7x fast path; elementwise math stays f32) ---
  packed16 = pack_params(params, mxu_dtype=jnp.bfloat16)
  enc16 = precompute_encoder(enc, params, mxu_dtype=jnp.bfloat16)
  out16, hid16, aw16 = attn_decoder_forward(x, hidden, enc16, packed16)
  jax.block_until_ready((out16, hid16, aw16))
  assert jnp.allclose(out16, ref_out, atol=1e-1, rtol=1e-1)
  assert jnp.allclose(hid16, ref_hid, atol=1e-1, rtol=1e-1)
  assert jnp.allclose(aw16, ref_aw, atol=1e-1, rtol=1e-1)

  # --- amortized T-step decode (weights / enc_wca VMEM-resident across steps) ---
  T = 6
  xs = jax.random.normal(k_s, (T, HIDDEN), dtype=jnp.float32)  # teacher-forced step inputs
  d_out, d_hid, d_aw = attn_decoder_decode(xs, hidden, enc32, packed32)
  jax.block_until_ready((d_out, d_hid, d_aw))
  h_cur = hidden
  for t in range(T):
    o_t, h_cur, a_t = reference_forward(xs[t], h_cur, enc, params)
    assert jnp.allclose(d_out[t:t + 1], o_t, atol=1e-3, rtol=1e-3)
    assert jnp.allclose(d_hid[t:t + 1], h_cur.reshape(1, HIDDEN), atol=1e-3, rtol=1e-3)
    assert jnp.allclose(d_aw[t:t + 1], a_t, atol=1e-3, rtol=1e-3)

  print("KERNEL_OK")
</pallas_src>

<mosaic_0001>
module attributes {stable_mosaic.version = 11 : i64} {
  func.func @attn_decoder_kernel(%arg0: memref<1x32xf32, #tpu.memory_space<vmem>>, %arg1: memref<1x32xf32, #tpu.memory_space<vmem>>, %arg2: memref<20x32xf32, #tpu.memory_space<vmem>>, %arg3: memref<64x432xf32, #tpu.memory_space<vmem>>, %arg4: memref<1x432xf32, #tpu.memory_space<vmem>>, %arg5: memref<1x48xf32, #tpu.memory_space<vmem>>, %arg6: memref<1x1x32xf32, #tpu.memory_space<vmem>>, %arg7: memref<1x20xf32, #tpu.memory_space<vmem>>) attributes {dimension_semantics = [], scalar_prefetch = 0 : i64, scratch_operands = 0 : i64, tpu.core_type = #tpu.core_type<tc>} {
    %c0 = arith.constant 0 : index
    %c0_0 = arith.constant 0 : index
    %0 = vector.load %arg0[%c0, %c0_0] : memref<1x32xf32, #tpu.memory_space<vmem>>, vector<1x32xf32>
    %c0_1 = arith.constant 0 : index
    %c0_2 = arith.constant 0 : index
    %1 = vector.load %arg1[%c0_1, %c0_2] : memref<1x32xf32, #tpu.memory_space<vmem>>, vector<1x32xf32>
    %2 = tpu.concatenate %0, %1 in 1 : vector<1x32xf32>, vector<1x32xf32> -> vector<1x64xf32>
    %c0_3 = arith.constant 0 : index
    %c0_4 = arith.constant 0 : index
    %3 = vector.load %arg3[%c0_3, %c0_4] : memref<64x432xf32, #tpu.memory_space<vmem>>, vector<64x148xf32>
    %cst = arith.constant dense<0.000000e+00> : vector<1x148xf32>
    %4 = tpu.matmul %2, %3, %cst {dimension_numbers = #tpu.dot_dimension_numbers<[1], [0], [0], [1], [0, 0, 1, 1], [], []>} : vector<1x64xf32>, vector<64x148xf32>, vector<1x148xf32> -> vector<1x148xf32>
    %c0_5 = arith.constant 0 : index
    %c0_6 = arith.constant 0 : index
    %5 = vector.load %arg4[%c0_5, %c0_6] : memref<1x432xf32, #tpu.memory_space<vmem>>, vector<1x148xf32>
    %6 = arith.addf %4, %5 : vector<1x148xf32>
    %7 = vector.extract_strided_slice %6 {offsets = [0, 0], sizes = [1, 20], strides = [1, 1]} : vector<1x148xf32> to vector<1x20xf32>
    %cst_7 = arith.constant dense<0xFF800000> : vector<1xf32>
    %8 = vector.multi_reduction <maximumf>, %7, %cst_7 [1] : vector<1x20xf32> to vector<1xf32>
    %9 = vector.shape_cast %8 : vector<1xf32> to vector<1x1xf32>
    %10 = vector.broadcast %9 : vector<1x1xf32> to vector<1x20xf32>
    %11 = arith.subf %7, %10 : vector<1x20xf32>
    %12 = math.exp %11 : vector<1x20xf32>
    %cst_8 = arith.constant dense<0.000000e+00> : vector<1xf32>
    %13 = vector.multi_reduction <add>, %12, %cst_8 [1] : vector<1x20xf32> to vector<1xf32>
    %14 = vector.shape_cast %13 : vector<1xf32> to vector<1x1xf32>
    %15 = tpu.reciprocal %14 {approx = true} : vector<1x1xf32> -> vector<1x1xf32>
    %16 = arith.mulf %14, %15 : vector<1x1xf32>
    %cst_9 = arith.constant 2.000000e+00 : f32
    %17 = vector.broadcast %cst_9 : f32 to vector<1x1xf32>
    %18 = arith.subf %17, %16 : vector<1x1xf32>
    %19 = arith.mulf %15, %18 : vector<1x1xf32>
    %20 = vector.broadcast %19 : vector<1x1xf32> to vector<1x20xf32>
    %21 = arith.mulf %12, %20 : vector<1x20xf32>
    %22 = vector.extract_strided_slice %6 {offsets = [0, 20], sizes = [1, 32], strides = [1, 1]} : vector<1x148xf32> to vector<1x32xf32>
    %c0_10 = arith.constant 0 : index
    %c0_11 = arith.constant 0 : index
    %23 = vector.load %arg2[%c0_10, %c0_11] : memref<20x32xf32, #tpu.memory_space<vmem>>, vector<20x32xf32>
    %cst_12 = arith.constant dense<0.000000e+00> : vector<1x32xf32>
    %24 = tpu.matmul %21, %23, %cst_12 {dimension_numbers = #tpu.dot_dimension_numbers<[1], [0], [0], [1], [0, 0, 1, 1], [], []>} : vector<1x20xf32>, vector<20x32xf32>, vector<1x32xf32> -> vector<1x32xf32>
    %25 = arith.addf %22, %24 : vector<1x32xf32>
    %cst_13 = arith.constant 0.000000e+00 : f32
    %26 = vector.broadcast %cst_13 : f32 to vector<1x32xf32>
    %27 = arith.maximumf %25, %26 : vector<1x32xf32>
    %c0_14 = arith.constant 0 : index
    %c256 = arith.constant 256 : index
    %28 = vector.load %arg3[%c0_14, %c256] : memref<64x432xf32, #tpu.memory_space<vmem>>, vector<32x96xf32>
    %cst_15 = arith.constant dense<0.000000e+00> : vector<1x96xf32>
    %29 = tpu.matmul %27, %28, %cst_15 {dimension_numbers = #tpu.dot_dimension_numbers<[1], [0], [0], [1], [0, 0, 1, 1], [], []>} : vector<1x32xf32>, vector<32x96xf32>, vector<1x96xf32> -> vector<1x96xf32>
    %c0_16 = arith.constant 0 : index
    %c256_17 = arith.constant 256 : index
    %30 = vector.load %arg4[%c0_16, %c256_17] : memref<1x432xf32, #tpu.memory_space<vmem>>, vector<1x96xf32>
    %31 = arith.addf %29, %30 : vector<1x96xf32>
    %32 = vector.extract_strided_slice %31 {offsets = [0, 0], sizes = [1, 32], strides = [1, 1]} : vector<1x96xf32> to vector<1x32xf32>
    %33 = vector.extract_strided_slice %6 {offsets = [0, 52], sizes = [1, 32], strides = [1, 1]} : vector<1x148xf32> to vector<1x32xf32>
    %34 = arith.addf %32, %33 : vector<1x32xf32>
    %35 = arith.negf %34 : vector<1x32xf32>
    %36 = math.exp %35 : vector<1x32xf32>
    %cst_18 = arith.constant 1.000000e+00 : f32
    %37 = vector.broadcast %cst_18 : f32 to vector<1x32xf32>
    %38 = arith.addf %37, %36 : vector<1x32xf32>
    %39 = arith.divf %37, %38 : vector<1x32xf32>
    %40 = vector.extract_strided_slice %31 {offsets = [0, 32], sizes = [1, 32], strides = [1, 1]} : vector<1x96xf32> to vector<1x32xf32>
    %41 = vector.extract_strided_slice %6 {offsets = [0, 84], sizes = [1, 32], strides = [1, 1]} : vector<1x148xf32> to vector<1x32xf32>
    %42 = arith.addf %40, %41 : vector<1x32xf32>
    %43 = arith.negf %42 : vector<1x32xf32>
    %44 = math.exp %43 : vector<1x32xf32>
    %cst_19 = arith.constant 1.000000e+00 : f32
    %45 = vector.broadcast %cst_19 : f32 to vector<1x32xf32>
    %46 = arith.addf %45, %44 : vector<1x32xf32>
    %47 = arith.divf %45, %46 : vector<1x32xf32>
    %48 = vector.extract_strided_slice %31 {offsets = [0, 64], sizes = [1, 32], strides = [1, 1]} : vector<1x96xf32> to vector<1x32xf32>
    %49 = vector.extract_strided_slice %6 {offsets = [0, 116], sizes = [1, 32], strides = [1, 1]} : vector<1x148xf32> to vector<1x32xf32>
    %50 = arith.mulf %39, %49 : vector<1x32xf32>
    %51 = arith.addf %48, %50 : vector<1x32xf32>
    %52 = math.tanh %51 : vector<1x32xf32>
    %cst_20 = arith.constant 1.000000e+00 : f32
    %53 = vector.broadcast %cst_20 : f32 to vector<1x32xf32>
    %54 = arith.subf %53, %47 : vector<1x32xf32>
    %55 = arith.mulf %54, %52 : vector<1x32xf32>
    %56 = arith.mulf %47, %1 : vector<1x32xf32>
    %57 = arith.addf %55, %56 : vector<1x32xf32>
    %c0_21 = arith.constant 0 : index
    %c384 = arith.constant 384 : index
    %58 = vector.load %arg3[%c0_21, %c384] : memref<64x432xf32, #tpu.memory_space<vmem>>, vector<32x48xf32>
    %cst_22 = arith.constant dense<0.000000e+00> : vector<1x48xf32>
    %59 = tpu.matmul %57, %58, %cst_22 {dimension_numbers = #tpu.dot_dimension_numbers<[1], [0], [0], [1], [0, 0, 1, 1], [], []>} : vector<1x32xf32>, vector<32x48xf32>, vector<1x48xf32> -> vector<1x48xf32>
    %c0_23 = arith.constant 0 : index
    %c384_24 = arith.constant 384 : index
    %60 = vector.load %arg4[%c0_23, %c384_24] : memref<1x432xf32, #tpu.memory_space<vmem>>, vector<1x48xf32>
    %61 = arith.addf %59, %60 : vector<1x48xf32>
    %cst_25 = arith.constant dense<0xFF800000> : vector<1xf32>
    %62 = vector.multi_reduction <maximumf>, %61, %cst_25 [1] : vector<1x48xf32> to vector<1xf32>
    %63 = vector.shape_cast %62 : vector<1xf32> to vector<1x1xf32>
    %64 = vector.broadcast %63 : vector<1x1xf32> to vector<1x48xf32>
    %65 = arith.subf %61, %64 : vector<1x48xf32>
    %66 = math.exp %65 : vector<1x48xf32>
    %cst_26 = arith.constant dense<0.000000e+00> : vector<1xf32>
    %67 = vector.multi_reduction <add>, %66, %cst_26 [1] : vector<1x48xf32> to vector<1xf32>
    %68 = vector.shape_cast %67 : vector<1xf32> to vector<1x1xf32>
    %69 = math.log %68 : vector<1x1xf32>
    %70 = vector.broadcast %63 : vector<1x1xf32> to vector<1x48xf32>
    %71 = arith.subf %61, %70 : vector<1x48xf32>
    %72 = vector.broadcast %69 : vector<1x1xf32> to vector<1x48xf32>
    %73 = arith.subf %71, %72 : vector<1x48xf32>
    %c0_27 = arith.constant 0 : index
    %c0_28 = arith.constant 0 : index
    %74 = vector.load %arg5[%c0_27, %c0_28] : memref<1x48xf32, #tpu.memory_space<vmem>>, vector<1x48xf32>
    tpu.vector_store %arg5[%c0_27, %c0_28], %73 {strides = array<i32>} : memref<1x48xf32, #tpu.memory_space<vmem>>, vector<1x48xf32>,
    %75 = vector.shape_cast %57 : vector<1x32xf32> to vector<1x1x32xf32>
    %c0_29 = arith.constant 0 : index
    %c0_30 = arith.constant 0 : index
    %c0_31 = arith.constant 0 : index
    %76 = vector.load %arg6[%c0_29, %c0_30, %c0_31] : memref<1x1x32xf32, #tpu.memory_space<vmem>>, vector<1x1x32xf32>
    tpu.vector_store %arg6[%c0_29, %c0_30, %c0_31], %75 {strides = array<i32>} : memref<1x1x32xf32, #tpu.memory_space<vmem>>, vector<1x1x32xf32>,
    %c0_32 = arith.constant 0 : index
    %c0_33 = arith.constant 0 : index
    %77 = vector.load %arg7[%c0_32, %c0_33] : memref<1x20xf32, #tpu.memory_space<vmem>>, vector<1x20xf32>
    tpu.vector_store %arg7[%c0_32, %c0_33], %21 {strides = array<i32>} : memref<1x20xf32, #tpu.memory_space<vmem>>, vector<1x20xf32>,
    return
  }
}

</mosaic_0001>

<bundles_post_ra>
// kernel: tpu_custom_call.1
= control target key start
LH: loop header
LB: loop body
LE: loop exit
PB: predicated region body
PF: predicated region fallthrough
CT: control target
= control target key end

     0   :  { %13 = vsyncpa [#allocation3], 0  ;;  %s871_s0 = inlined_call_operand.hbm [shape: f32[1,32], index: 0, kind: input, shape index: {}]   ;;  %s872_s1 = inlined_call_operand.vmem [shape: f32[1,32], index: 1, kind: input, shape index: {}]   ;;  %s873_s2 = inlined_call_operand.hbm [shape: f32[20,32], index: 2, kind: input, shape index: {}]   ;;  %s874_s3 = inlined_call_operand.hbm [shape: f32[64,432], index: 3, kind: input, shape index: {}]   ;;  %s875_s4 = inlined_call_operand.vmem [shape: f32[1,432], index: 4, kind: input, shape index: {}]   ;;  %s876_s5 = inlined_call_operand.hbm [shape: f32[1,48], index: 5, kind: output, shape index: {0}]   ;;  %s877_s6 = inlined_call_operand.hbm [shape: f32[1,1,32], index: 6, kind: output, shape index: {1}]   ;;  %s878_s7 = inlined_call_operand.hbm [shape: f32[1,20], index: 7, kind: output, shape index: {2}]  }
   0x1   :  { %14 = vsyncpa [#allocation6], 0 }
   0x2   :  { %15 = vsyncpa [#allocation4], 0 }
   0x3   :  { %16 = vsyncpa [#allocation10], 0  ;;  %s748_s24 = smov [#allocation5]  }
   0x4   :  { %s34_s25 = sshll.u32 %s748_s24, 4  ;;  %s35_s25 = int_to_ptr.vmem [resolvable:$true] %s34_s25 }
   0x5   :  { %s628_s26 = scalar_lea.vmem %s35_s25, 384  ;;  %p633_p1 = scmp.lt.s32.totalorder %s35_s25, %s35_s25 }
   0x6   :  { %p629_p0 = scmp.ne.s32.totalorder %s35_s25, %s628_s26  ;;  %p634_p2 = scmp.lt.s32.totalorder %s628_s26, %s628_s26 }
   0x8   :  { %p635_p3 = por %p634_p2, %p633_p1 }
   0xa   :  { %p636_p4 = pnand %p635_p3, %p629_p0 }
   0xc   :  { %639 = shalt.err (!%p636_p4)
}
   0xd   :  { %s749_s27 = smov 128   ;;  %s750_s28 = smov 8  }
   0xe   :  { %40 = dma.hbm_to_vmem [thread:$0]  %s873_s2, 384, %s35_s25, [#allocation6], %s749_s27, %s749_s27, %s750_s28  }
   0xf   :  { %s751_s8 = smov [#allocation2]   ;;  %s752_s10 = smov [#allocation7]  }
  0x10   :  { %s23_s9 = sshll.u32 %s751_s8, 4  ;;  %s46_s11 = sshll.u32 %s752_s10, 4  ;;  %s24_s9 = int_to_ptr.vmem [resolvable:$true] %s23_s9  ;;  %s47_s11 = int_to_ptr.vmem [resolvable:$true] %s46_s11 }
  0x11   :  { %s648_s12 = scalar_lea.vmem %s24_s9, 16  ;;  %s652_s13 = scalar_lea.vmem %s24_s9, 32 }
  0x12   :  { %p649_p5 = scmp.ne.s32.totalorder %s24_s9, %s648_s12  ;;  %p653_p6 = scmp.lt.s32.totalorder %s24_s9, %s24_s9 }
  0x13   :  { %p654_p7 = scmp.lt.s32.totalorder %s652_s13, %s648_s12 }
  0x15   :  { %p655_p8 = por %p654_p7, %p653_p6 }
  0x17   :  { %p656_p9 = pnand %p655_p8, %p649_p5 }
  0x19   :  { %659 = shalt.err (!%p656_p9)
}
  0x1a   :  { %26 = dma.hbm_to_vmem [thread:$0]  %s871_s0, 16, %s24_s9, [#allocation3]  }
  0x1b   :  { %s668_s16 = scalar_lea.vmem %s47_s11, 4096  ;;  %p673_p11 = scmp.lt.s32.totalorder %s47_s11, %s47_s11 }
  0x1c   :  { %p669_p10 = scmp.ne.s32.totalorder %s47_s11, %s668_s16  ;;  %p674_p12 = scmp.lt.s32.totalorder %s668_s16, %s668_s16 }
  0x1e   :  { %p675_p13 = por %p674_p12, %p673_p11 }
  0x20   :  { %p676_p0 = pnand %p675_p13, %p669_p10 }
  0x22   :  { %679 = shalt.err (!%p676_p0)
}
  0x23   :  { %s753_s2 = smov 512   ;;  %s754_s17 = smov 32  }
  0x24   :  { %52 = dma.hbm_to_vmem [thread:$0]  %s874_s3, 4096, %s47_s11, [#allocation6], %s753_s2, %s753_s2, %s754_s17  }
  0x25   :  { %740 = dma.done.wait [#allocation3], 16  }
  0x26   :  { %741 = vsyncadd [#allocation3], 4294967280 }
  0x27   :  { %742 = dma.done.wait [#allocation6], 4480  }
  0x28   :  { %743 = vsyncadd [#allocation6], 4294962816  ;;  %v755_v0 = vmov 0.0   ;;  %v536_v1 = vld [vmem:[%s872_s1] ss:$0 sm:$0xff]  ;;  %v91_v2 = vld [vmem:[#allocation7 + $0xe8] sm:$0xff]  ;;  %v94_v21 = vlaneseq }
  0x29   :  { %172 = vmatprep.mubr.f32.mxu0 %v755_v0  ;;  %557 = vmatprep.subr.mxu1 %v755_v0  ;;  %v90_v3 = vld [vmem:[#allocation7 + $0xe0] sm:$0xff]  ;;  %v89_v4 = vld [vmem:[#allocation7 + $0xc8] sm:$0xff]  ;;  %vm74_vm0 = vcmask 261120   ;;  %vm104_vm1 = vcmask 523264   ;;  %vm179_vm2 = vcmask 155648   ;;  %vm201_vm3 = vcmask 1043456  }
  0x2a   :  { %71 = vrot.lane.b32.xlu0 %v536_v1, %s754_s17  ;;  %124 = vmatprep.subr.mxu0 %v91_v2  ;;  %v88_v5 = vld [vmem:[#allocation7 + $0xc0] sm:$0xff]  ;;  %v87_v6 = vld [vmem:[#allocation7 + $0xa8] sm:$0xff]  ;;  %v824_v22 = vshrl.u32 %v94_v21, 7  ;;  %v196_v34 = vld [vmem:[#allocation5 + $0x10] sm:$0xf]  ;;  %vm756_vm4 = vmmov 0  }
  0x2b   :  { %125 = vmatpush1.msra.mxu0 %v90_v3  ;;  %v86_v7 = vld [vmem:[#allocation7 + $0xa0] sm:$0xff]  ;;  %v85_v8 = vld [vmem:[#allocation7 + $0x88] sm:$0xff]  ;;  %558 = vmatpush3.msk.msra.mxu1 %vm201_vm3, %v196_v34  ;;  %v195_v35 = vld [vmem:[#allocation5 + $0x8] sm:$0xff]  ;;  %vm197_vm5 = vcmask 162816   ;;  %s757_s21 = smov 20   ;;  %s758_s22 = smov 108  }
  0x2c   :  { %126 = vmatprep.subr.mxu0 %v89_v4  ;;  %v84_v9 = vld [vmem:[#allocation7 + $0x80] sm:$0xff]  ;;  %v83_v10 = vld [vmem:[#allocation7 + $0x68] sm:$0xff]  ;;  %v96_v23 = vsub.s32 0, %v824_v22  ;;  %559 = vmatprep.subr.mxu1 %v755_v0  ;;  %v284_v45 = vld [vmem:[#allocation7 + $0x70] sm:$0xff]  ;;  %v100_v52 = vsub.s32 1, %v824_v22  ;;  %s759_s23 = smov 76  }
  0x2d   :  { %127 = vmatpush1.msra.mxu0 %v88_v5  ;;  %v82_v11 = vld [vmem:[#allocation7 + $0x60] sm:$0xff]  ;;  %v81_v12 = vld [vmem:[#allocation7 + $0x48] sm:$0xff]  ;;  %560 = vmatpush3.msra.mxu1 %v195_v35  ;;  %v283_v46 = vld [vmem:[#allocation7 + $0x50] sm:$0xff]  ;;  %s760_s24 = smov 12   ;;  %vm377_vm6 = vcmask 97280   ;;  %s761_s27 = smov 64  }
  0x2e   :  { %128 = vmatprep.subr.mxu0 %v87_v6  ;;  %v80_v13 = vld [vmem:[#allocation7 + $0x40] sm:$0xff]  ;;  %v79_v14 = vld [vmem:[#allocation7 + $0x28] sm:$0xff]  ;;  %561 = vmatprep.subr.mxu1 %v755_v0  ;;  %v282_v47 = vld [vmem:[#allocation7 + $0x30] sm:$0xff]  ;;  %s762_s28 = smov 96   ;;  %vm490_vm7 = vcmask 253952   ;;  %vm475_vm8 = vcmask 385024  }
  0x2f   :  { %129 = vmatpush1.msra.mxu0 %v86_v7  ;;  %v78_v15 = vld [vmem:[#allocation7 + $0x20] sm:$0xff]  ;;  %v77_v16 = vld [vmem:[#allocation7 + $0x8] sm:$0xff]  ;;  %563 = vmatprep.mubr.msk.f32.mxu1 %vm756_vm4, %v755_v0  ;;  %v281_v48 = vld [vmem:[#allocation7 + $0x10] sm:$0xff]  ;;  %s763_s8 = smov [#allocation9]  }
  0x30   :  { %130 = vmatprep.subr.mxu0 %v85_v8  ;;  %v76_v17 = vld [vmem:[#allocation7] sm:$0xff]  ;;  %v194_v36 = vld [vmem:[#allocation5] sm:$0xff]  ;;  %s509_s9 = sshll.u32 %s763_s8, 4  ;;  %s510_s9 = int_to_ptr.vmem [resolvable:$true] %s509_s9 }
  0x31   :  { %131 = vmatpush1.msra.mxu0 %v84_v9  ;;  %v64_v18 = vld [vmem:[#allocation2] sm:$0x1]  ;;  %562 = vmatpush3.msra.mxu1 %v194_v36  ;;  %v285_v57 = vld [vmem:[%s875_s4 + $0x2] sm:$0x1]  ;;  %s680_s10 = scalar_lea.vmem %s510_s9, 16  ;;  %p685_p2 = scmp.lt.s32.totalorder %s510_s9, %s510_s9 }
  0x32   :  { %132 = vmatprep.subr.mxu0 %v83_v10  ;;  %v92_v24 = vld [vmem:[%s875_s4] sm:$0x3]  ;;  %566 = vmatprep.subr.mxu1 %v755_v0  ;;  %v398_v10 = vld [vmem:[#allocation7 + $0x78] sm:$0xff]  ;;  %p681_p1 = scmp.ne.s32.totalorder %s510_s9, %s680_s10 }
  0x33   :  { %133 = vmatpush1.msra.mxu0 %v82_v11  ;;  %v97_v25 = vrot.slane %v92_v24, %v96_v23  ;;  %v101_v53 = vrot.slane %v92_v24, %v100_v52  ;;  %v397_v11 = vld [vmem:[#allocation7 + $0x58] sm:$0xff] }
  0x34   :  { %134 = vmatprep.subr.mxu0 %v81_v12  ;;  %v396_v12 = vld [vmem:[#allocation7 + $0x38] sm:$0xff] }
  0x35   :  { %135 = vmatpush1.msra.mxu0 %v80_v13  ;;  %v395_v13 = vld [vmem:[#allocation7 + $0x18] sm:$0xff] }
  0x36   :  { %136 = vmatprep.subr.mxu0 %v79_v14 }
  0x37   :  { %137 = vmatpush1.msra.mxu0 %v78_v15 }
  0x38   :  { %138 = vmatprep.subr.mxu0 %v77_v16 }
  0x39   :  { %139 = vmatpush1.msra.mxu0 %v76_v17 }
  0x9c   :  { %v820_v19 = vpop.permute.xlu0 %71 }
  0x9d   :  { %v75_v20 = vsel %vm74_vm0, %v64_v18, %v820_v19 }
  0x9e   :  { %537 = vmatmul.mubr.msk.f32.vlgmr.msra.gmra.mxu0 %vm104_vm1, %v75_v20 }
 0x15e   :  { %v174_v26 = vpop.f32.mrf.mxu0 }
 0x15f   :  { %v175_v27 = vadd.f32 %v174_v26, %v97_v25 }
 0x160   :  { %v176_v54 = vpop.f32.mrf.mxu0 }
 0x161   :  { %v180_v28 = vsel %vm179_vm2, %v175_v27, -inf  ;;  %v177_v55 = vadd.f32 %v176_v54, %v101_v53 }
 0x162   :  { %181 = vmax.xlane.f32.xlu0 %v180_v28 }
 0x1eb   :  { %v182_v29 = vpop.xlane.xlu0 %181 }
 0x1ec   :  { %v183_v30 = vsub.f32 %v175_v27, %v182_v29 }
 0x1ee   :  { %v184_v31 = vmul.f32 1.442695, %v183_v30 }
 0x1f0   :  { %606 = vpow2.f32 %v184_v31 }
 0x1fd   :  { %v607_v32 = vpop.eup %606 }
 0x1fe   :  { %v186_v33 = vsel %vm179_vm2, %v607_v32, 0.0 }
 0x1ff   :  { %187 = vadd.xlane.f32.xlu1 %v186_v33 }
 0x288   :  { %v188_v37 = vpop.xlane.xlu1 %187 }
 0x289   :  { %608 = vrcp.f32 %v188_v37 }
 0x296   :  { %v609_v38 = vpop.eup %608 }
 0x297   :  { %v190_v39 = vmul.f32 %v609_v38, %v188_v37 }
 0x299   :  { %v191_v40 = vsub.f32 2.0, %v190_v39 }
 0x29b   :  { %v192_v41 = vmul.f32 %v609_v38, %v191_v40 }
 0x29d   :  { %v193_v42 = vmul.f32 %v607_v32, %v192_v41 }
 0x29f   :  { %492 = vst.msk [vmem:[#allocation11] sm:$0x1] %vm179_vm2, %v193_v42  ;;  %564 = vmatmul.mubr.msk.f32.vlgmr.msra.gmra.mxu1 %vm197_vm5, %v193_v42 }
 0x2a0   :  { %574 = vmatprep.mubr.msk.f32.mxu1 %vm756_vm4, %v755_v0  ;;  %567 = vmatpush3.msra.mxu1 %v284_v45 }
 0x2a1   :  { %568 = vmatprep.subr.mxu1 %v755_v0 }
 0x2a2   :  { %569 = vmatpush3.msra.mxu1 %v283_v46 }
 0x2a3   :  { %570 = vmatprep.subr.mxu1 %v755_v0 }
 0x2a4   :  { %571 = vmatpush3.msra.mxu1 %v282_v47 }
 0x2a5   :  { %572 = vmatprep.subr.mxu1 %v755_v0 }
 0x2a6   :  { %573 = vmatpush3.msra.mxu1 %v281_v48 }
 0x2a7   :  { %577 = vmatprep.subr.mxu1 %v755_v0 }
 0x35f   :  { %v271_v43 = vpop.f32.mrf.mxu1 }
 0x360   :  { %276 = vrot.lane.b32.xlu1 %v271_v43, %s757_s21 }
 0x361   :  { %v565_v44 = vpop.f32.mrf.mxu1 }
 0x3d2   :  { %v277_v49 = vpop.permute.xlu1 %276 }
 0x3d3   :  { %v279_v50 = vadd.f32 %v277_v49, %v175_v27 }
 0x3d5   :  { %v280_v51 = vmax.f32 %v279_v50, 0.0 }
 0x3d7   :  { %287 = vrot.lane.b32.xlu1 %v280_v51, %s758_s22 }
 0x3db   :  { %362 = vrot.lane.b32.xlu1 %v175_v27, %s759_s23 }
 0x3df   :  { %373 = vrot.lane.b32.xlu1 %v175_v27, %s760_s24 }
 0x3e3   :  { %375 = vrot.lane.b32.xlu1 %v177_v55, %s760_s24 }
 0x449   :  { %v288_v56 = vpop.permute.xlu1 %287 }
 0x44a   :  { %575 = vmatmul.mubr.msk.f32.vlgmr.msra.gmra.mxu1 %vm74_vm0, %v288_v56 }
 0x44b   :  { %585 = vmatprep.mubr.msk.f32.mxu1 %vm756_vm4, %v755_v0  ;;  %578 = vmatpush3.msra.mxu1 %v398_v10 }
 0x44c   :  { %579 = vmatprep.subr.mxu1 %v755_v0 }
 0x44d   :  { %v363_v60 = vpop.permute.xlu1 %362  ;;  %580 = vmatpush3.msra.mxu1 %v397_v11 }
 0x44e   :  { %581 = vmatprep.subr.mxu1 %v755_v0 }
 0x44f   :  { %582 = vmatpush3.msra.mxu1 %v396_v12 }
 0x450   :  { %583 = vmatprep.subr.mxu1 %v755_v0  ;;  %v399_v0 = vld [vmem:[%s875_s4 + $0x3] sm:$0x1]  ;;  %s684_s4 = scalar_lea.vmem %s510_s9, 32 }
 0x451   :  { %v374_v3 = vpop.permute.xlu1 %373  ;;  %584 = vmatpush3.msra.mxu1 %v395_v13  ;;  %p686_p3 = scmp.lt.s32.totalorder %s684_s4, %s680_s10 }
 0x453   :  { %p687_p4 = por %p686_p3, %p685_p2 }
 0x455   :  { %v376_v4 = vpop.permute.xlu1 %375  ;;  %p688_p5 = pnand %p687_p4, %p681_p1 }
 0x456   :  { %v378_v6 = vsel %vm377_vm6, %v374_v3, %v376_v4 }
 0x50a   :  { %v357_v58 = vpop.f32.mrf.mxu1 }
 0x50b   :  { %v358_v59 = vadd.f32 %v357_v58, %v285_v57 }
 0x50c   :  { %v576_v61 = vpop.f32.mrf.mxu1 }
 0x50d   :  { %v365_v62 = vadd.f32 %v363_v60, %v358_v59 }
 0x50f   :  { %v541_v63 = vmul.f32 -1.442695, %v365_v62 }
 0x511   :  { %610 = vpow2.f32 %v541_v63 }
 0x51e   :  { %v611_v1 = vpop.eup %610 }
 0x51f   :  { %v369_v2 = vadd.f32 1.0, %v611_v1 }
 0x521   :  { %612 = vrcp.f32 %v369_v2 }
 0x52e   :  { %v613_v5 = vpop.eup %612 }
 0x52f   :  { %v380_v7 = vmul.f32 %v613_v5, %v378_v6  ;;  %v387_v15 = vsub.f32 1.0, %v613_v5  ;;  %v393_v17 = vmul.f32 %v613_v5, %v820_v19 }
 0x531   :  { %382 = vrot.lane.b32.xlu0 %v380_v7, %s761_s27 }
 0x5a3   :  { %v383_v8 = vpop.permute.xlu0 %382 }
 0x5a4   :  { %v385_v9 = vadd.f32 %v383_v8, %v358_v59 }
 0x5a6   :  { %614 = vtanh.f32 %v385_v9 }
 0x5b3   :  { %v615_v14 = vpop.eup %614 }
 0x5b4   :  { %389 = vrot.lane.b32.xlu1 %v615_v14, %s762_s28 }
 0x626   :  { %v390_v16 = vpop.permute.xlu1 %389 }
 0x627   :  { %v392_v18 = vmul.f32 %v390_v16, %v387_v15 }
 0x629   :  { %v394_v20 = vadd.f32 %v393_v17, %v392_v18 }
 0x62b   :  { %401 = vrot.lane.b32.xlu1 %v394_v20, %s762_s28 }
 0x69d   :  { %v402_v21 = vpop.permute.xlu1 %401 }
 0x69e   :  { %586 = vmatmul.mubr.msk.f32.vlgmr.msra.gmra.mxu1 %vm74_vm0, %v402_v21  ;;  %491 = vst.msk [vmem:[#allocation9] sm:$0x1] %vm490_vm7, %v402_v21 }
 0x75e   :  { %v471_v22 = vpop.f32.mrf.mxu1 }
 0x75f   :  { %v472_v23 = vadd.f32 %v471_v22, %v399_v0 }
 0x760   :  { %v587_v24 = vpop.f32.mrf.mxu1 }
 0x761   :  { %v476_v25 = vsel %vm475_vm8, %v472_v23, -inf }
 0x762   :  { %477 = vmax.xlane.f32.xlu1 %v476_v25 }
 0x7eb   :  { %v478_v19 = vpop.xlane.xlu1 %477 }
 0x7ec   :  { %v479_v26 = vsub.f32 %v472_v23, %v478_v19 }
 0x7ee   :  { %v480_v27 = vmul.f32 1.442695, %v479_v26 }
 0x7f0   :  { %616 = vpow2.f32 %v480_v27 }
 0x7fd   :  { %v617_v28 = vpop.eup %616 }
 0x7fe   :  { %v482_v29 = vsel %vm475_vm8, %v617_v28, 0.0 }
 0x7ff   :  { %483 = vadd.xlane.f32.xlu0 %v482_v29 }
 0x800   :  { %691 = shalt.err (!%p688_p5)
}
 0x801   :  { %512 = dma.vmem_to_hbm [thread:$0]  %s510_s9, 16, %s877_s6, [#allocation10]  }
 0x802   :  { %s764_s13 = smov [#allocation11]  }
 0x803   :  { %s519_s14 = sshll.u32 %s764_s13, 4  ;;  %s520_s14 = int_to_ptr.vmem [resolvable:$true] %s519_s14 }
 0x804   :  { %s700_s15 = scalar_lea.vmem %s520_s14, 16  ;;  %s704_s16 = scalar_lea.vmem %s520_s14, 32 }
 0x805   :  { %p701_p6 = scmp.ne.s32.totalorder %s520_s14, %s700_s15  ;;  %p705_p7 = scmp.lt.s32.totalorder %s520_s14, %s520_s14 }
 0x806   :  { %p706_p8 = scmp.lt.s32.totalorder %s704_s16, %s700_s15 }
 0x808   :  { %p707_p9 = por %p706_p8, %p705_p7 }
 0x80a   :  { %p708_p10 = pnand %p707_p9, %p701_p6 }
 0x80c   :  { %711 = shalt.err (!%p708_p10)
}
 0x80d   :  { %522 = dma.vmem_to_hbm [thread:$0]  %s520_s14, 16, %s878_s7, [#allocation10]  }
 0x80e   :  { %s765_s18 = smov [#allocation8]  }
 0x80f   :  { %s499_s6 = sshll.u32 %s765_s18, 4  ;;  %s500_s6 = int_to_ptr.vmem [resolvable:$true] %s499_s6 }
 0x810   :  { %s720_s19 = scalar_lea.vmem %s500_s6, 16  ;;  %s724_s0 = scalar_lea.vmem %s500_s6, 32 }
 0x811   :  { %p721_p11 = scmp.ne.s32.totalorder %s500_s6, %s720_s19  ;;  %p725_p12 = scmp.lt.s32.totalorder %s500_s6, %s500_s6 }
 0x812   :  { %p726_p13 = scmp.lt.s32.totalorder %s724_s0, %s720_s19 }
 0x814   :  { %p727_p0 = por %p726_p13, %p725_p12 }
 0x816   :  { %p728_p1 = pnand %p727_p0, %p721_p11 }
 0x888   :  { %v484_v30 = vpop.xlane.xlu0 %483 }
 0x889   :  { %618 = vlog2.f32 %v484_v30 }
 0x896   :  { %v619_v31 = vpop.eup %618 }
 0x897   :  { %v486_v32 = vmul.f32 0.6931472, %v619_v31 }
 0x899   :  { %v487_v33 = vsub.f32 %v479_v26, %v486_v32 }
 0x89b   :  { %488 = vst.msk [vmem:[#allocation8] sm:$0x1] %vm475_vm8, %v487_v33 }
 0x89c   :  { %731 = shalt.err (!%p728_p1)
}
 0x89d   :  { %502 = dma.vmem_to_hbm [thread:$0]  %s500_s6, 16, %s876_s5, [#allocation4]  }
 0x89e   :  { %744 = dma.done.wait [#allocation4], 16  }
 0x89f   :  { %745 = vsyncadd [#allocation4], 4294967280 }
 0x8a0   :  { %746 = dma.done.wait [#allocation10], 32  }
 0x8a1   :  { %747 = vsyncadd [#allocation10], 4294967264 }
 0x8a2   :  { %532 = vsyncpa [#allocation3], 1 }
 0x8a3   :  { %533 = vsyncpa [#allocation6], 1 }
 0x8a4   :  { %534 = vsyncpa [#allocation4], 1 }
 0x8a5   :  { %535 = vsyncpa [#allocation10], 1 }

</bundles_post_ra>
